<compile_context>
chip_gen: v7x
topology: tpu7x:2x2x1
jax: 0.10.0
libtpu: 0.0.40
codegen_flags: <defaults>
</compile_context>

<pallas_src>
import functools
import math

import jax
import jax.numpy as jnp
from jax.experimental import pallas as pl
from jax.experimental.pallas import tpu as pltpu

LANE = 128  # pad head feature widths to this for unmasked, lane-dense stores


# ----------------------------------------------------------------------------
# Replicate the DAM-head layer-size logic from DAMGeneralML.__init__
# (input_dim is overridden to 512 inside __init__ — the IR_50 feature dim).
# ----------------------------------------------------------------------------
def dam_head_dims(input_dim=512, num_dim=10, num_layers=2):
    ratio = max(input_dim / num_dim, num_dim / input_dim)
    coef = ratio ** (1.0 / num_layers)
    dims = []
    d = input_dim
    for _ in range(num_layers):
        if d * coef > num_dim:
            dims.append((d, num_dim))
            d = num_dim
        else:
            nd = math.ceil(d * coef)
            dims.append((d, nd))
            d = nd
    dims.append((d, num_dim))          # trailing Linear after the for/else
    return dims                        # defaults -> [(512,10),(10,10),(10,10)]


# ----------------------------------------------------------------------------
# Pallas kernel: fused DAM MLP head (stem already folded into layer 1).
# ----------------------------------------------------------------------------
def make_dam_kernel(n_tail):
    def kernel(x_ref, w1_ref, wtail_ref, b_ref, out_ref):
        # x_ref     : [B, IN]            bf16
        # w1_ref    : [IN, 128]          bf16   (stem folded in, cols zero-padded)
        # wtail_ref : [n_tail, 128, 128] bf16   (rows/cols zero-padded)
        # b_ref     : [n_tail+1, 128]    f32    (lanes zero-padded)
        # out_ref   : [B, 128]           f32
        h = jnp.dot(x_ref[...], w1_ref[...],
                    preferred_element_type=jnp.float32)
        h = h + b_ref[0:1, :]
        if n_tail >= 1:
            h = jnp.maximum(h, 0.0)
        # Static Python unroll over the few tiny tail layers (LLO-visible).
        for li in range(n_tail):
            h = jnp.dot(h.astype(jnp.bfloat16), wtail_ref[li],
                        preferred_element_type=jnp.float32)
            h = h + b_ref[li + 1:li + 2, :]
            if li < n_tail - 1:
                h = jnp.maximum(h, 0.0)
        out_ref[...] = h

    return kernel


def _pad_cols(a, to):
    p = to - a.shape[1]
    return jnp.pad(a, ((0, 0), (0, p))) if p > 0 else a


def _pad_rows(a, to):
    p = to - a.shape[0]
    return jnp.pad(a, ((0, p), (0, 0))) if p > 0 else a


# ----------------------------------------------------------------------------
# One-time parameter prep (runs once, NOT on the per-call forward path):
# fold the stem into the first head Linear (valid: no bias/activation between
# them), cast weights to bf16, zero-pad to lane-dense 128 slabs, coalesce the
# tail weights and all biases into single stacked arrays.
# ----------------------------------------------------------------------------
def prepare_dam_operands(w_stem, head_params):
    n_tail = len(head_params) - 1
    assert n_tail >= 1
    assert all(w.shape[0] <= LANE and w.shape[1] <= LANE
               for (w, _) in head_params[1:])

    w1, b1 = head_params[0]
    w1_fused = w_stem.astype(jnp.float32) @ w1.astype(jnp.float32)  # [IN, d1]
    w1_p = _pad_cols(w1_fused, LANE).astype(jnp.bfloat16)           # [IN, 128]

    tail_ws = []
    biases = [_pad_cols(jnp.asarray(b1, jnp.float32).reshape(1, -1), LANE)]
    for (w, b) in head_params[1:]:
        wp = _pad_rows(_pad_cols(jnp.asarray(w, jnp.float32), LANE), LANE)
        tail_ws.append(wp.astype(jnp.bfloat16))
        biases.append(_pad_cols(jnp.asarray(b, jnp.float32).reshape(1, -1),
                                LANE))
    w_tail = jnp.stack(tail_ws, axis=0)          # [n_tail, 128, 128] bf16
    b_all = jnp.concatenate(biases, axis=0)      # [n_tail+1, 128]    f32

    return (jax.device_put(w1_p), jax.device_put(w_tail),
            jax.device_put(b_all))


# ----------------------------------------------------------------------------
# Forward: one jitted dispatch (reshape/cast + pallas_call + output slice).
# Returns (dam_out, dam_out), matching DAMGeneralML.forward.
# ----------------------------------------------------------------------------
@functools.partial(jax.jit, static_argnames=("num_dim",))
def dam_general_ml_forward(x, w1_p, w_tail_p, b_all_p, *, num_dim):
    B = x.shape[0]
    # TODO(synk): IR_50 backbone is an external pretrained module (not defined
    # in the provided source); a deterministic linear stem produces the 512-d
    # "feats" in its place and is folded into the first head Linear offline.
    x_flat = x.reshape(B, -1).astype(jnp.bfloat16)
    n_tail = w_tail_p.shape[0]

    out_padded = pl.pallas_call(
        make_dam_kernel(n_tail),
        out_shape=jax.ShapeDtypeStruct((B, LANE), jnp.float32),
        in_specs=[pl.BlockSpec(memory_space=pltpu.MemorySpace.VMEM)] * 4,
        out_specs=pl.BlockSpec(memory_space=pltpu.MemorySpace.VMEM),
    )(x_flat, w1_p, w_tail_p, b_all_p)

    dam_out = out_padded[:, :num_dim]   # padded lanes are identically zero
    return dam_out, dam_out


# ----------------------------------------------------------------------------
# Deterministic parameter construction (torch.nn.Linear-style uniform init).
# ----------------------------------------------------------------------------
def init_linear(key, fan_in, fan_out):
    kw, kb = jax.random.split(key)
    bound = 1.0 / math.sqrt(fan_in)
    w = jax.random.uniform(kw, (fan_in, fan_out), jnp.float32, -bound, bound)
    b = jax.random.uniform(kb, (1, fan_out), jnp.float32, -bound, bound)
    return w, b


if __name__ == "__main__":
    key = jax.random.PRNGKey(0)
    k_x, k_stem, *k_layers = jax.random.split(key, 2 + 3)

    # Small image input consistent with the module's NCHW conv input.
    # B=16 fills a bf16 (16,128) activation tile.
    B, C, H, W = 16, 3, 16, 16
    x = jax.random.normal(k_x, (B, C, H, W), jnp.float32)

    feat_dim = 512
    num_dim = 10
    dims = dam_head_dims(input_dim=feat_dim, num_dim=num_dim, num_layers=2)
    assert dims == [(512, 10), (10, 10), (10, 10)]

    # Stand-in backbone stem: flattened image -> 512-d feats.
    in_flat = C * H * W              # 768: already a multiple of 128 lanes
    bound = 1.0 / math.sqrt(in_flat)
    w_stem = jax.random.uniform(k_stem, (in_flat, feat_dim), jnp.float32,
                                -bound, bound)

    head_params = [init_linear(k, fi, fo)
                   for k, (fi, fo) in zip(k_layers, dims)]

    # One-time prep: stem fold + bf16 cast + padding + operand coalescing.
    w1_p, w_tail_p, b_all_p = prepare_dam_operands(w_stem, head_params)
    jax.block_until_ready((w1_p, w_tail_p, b_all_p))

    dam_out, dam_out2 = dam_general_ml_forward(
        x, w1_p, w_tail_p, b_all_p, num_dim=num_dim)
    jax.block_until_ready(dam_out)

    # Pure-f32, un-fused, un-padded reference. Tolerance is relaxed because
    # the kernel runs bf16 weights/activations on the MXU (f32 accumulation).
    h = x.reshape(B, -1) @ w_stem
    for li, (w, b) in enumerate(head_params):
        h = h @ w + b
        if li < len(head_params) - 1:
            h = jnp.maximum(h, 0.0)
    assert dam_out.shape == (B, num_dim)
    assert jnp.allclose(dam_out, h, atol=3e-2, rtol=3e-2), \
        float(jnp.max(jnp.abs(dam_out - h)))
    assert jnp.array_equal(dam_out, dam_out2)

    print("KERNEL_OK")
</pallas_src>

<mosaic_0001>
module attributes {stable_mosaic.version = 11 : i64} {
  func.func @kernel(%arg0: memref<16x768xbf16, #tpu.memory_space<vmem>>, %arg1: memref<768x128xbf16, #tpu.memory_space<vmem>>, %arg2: memref<2x128x128xbf16, #tpu.memory_space<vmem>>, %arg3: memref<3x128xf32, #tpu.memory_space<vmem>>, %arg4: memref<16x128xf32, #tpu.memory_space<vmem>>) attributes {dimension_semantics = [], scalar_prefetch = 0 : i64, scratch_operands = 0 : i64, tpu.core_type = #tpu.core_type<tc>} {
    %c0 = arith.constant 0 : index
    %c0_0 = arith.constant 0 : index
    %0 = vector.load %arg0[%c0, %c0_0] : memref<16x768xbf16, #tpu.memory_space<vmem>>, vector<16x768xbf16>
    %c0_1 = arith.constant 0 : index
    %c0_2 = arith.constant 0 : index
    %1 = vector.load %arg1[%c0_1, %c0_2] : memref<768x128xbf16, #tpu.memory_space<vmem>>, vector<768x128xbf16>
    %cst = arith.constant dense<0.000000e+00> : vector<16x128xf32>
    %2 = tpu.matmul %0, %1, %cst {dimension_numbers = #tpu.dot_dimension_numbers<[1], [0], [0], [1], [0, 0, 1, 1], [], []>} : vector<16x768xbf16>, vector<768x128xbf16>, vector<16x128xf32> -> vector<16x128xf32>
    %c0_3 = arith.constant 0 : index
    %c0_4 = arith.constant 0 : index
    %3 = vector.load %arg3[%c0_3, %c0_4] : memref<3x128xf32, #tpu.memory_space<vmem>>, vector<1x128xf32>
    %4 = vector.broadcast %3 : vector<1x128xf32> to vector<16x128xf32>
    %5 = arith.addf %2, %4 : vector<16x128xf32>
    %cst_5 = arith.constant 0.000000e+00 : f32
    %6 = vector.broadcast %cst_5 : f32 to vector<16x128xf32>
    %7 = arith.maximumf %5, %6 : vector<16x128xf32>
    %8 = arith.truncf %7 : vector<16x128xf32> to vector<16x128xbf16>
    %c0_6 = arith.constant 0 : index
    %c0_7 = arith.constant 0 : index
    %c0_8 = arith.constant 0 : index
    %9 = vector.load %arg2[%c0_6, %c0_7, %c0_8] : memref<2x128x128xbf16, #tpu.memory_space<vmem>>, vector<1x128x128xbf16>
    %10 = vector.shape_cast %9 : vector<1x128x128xbf16> to vector<128x128xbf16>
    %cst_9 = arith.constant dense<0.000000e+00> : vector<16x128xf32>
    %11 = tpu.matmul %8, %10, %cst_9 {dimension_numbers = #tpu.dot_dimension_numbers<[1], [0], [0], [1], [0, 0, 1, 1], [], []>} : vector<16x128xbf16>, vector<128x128xbf16>, vector<16x128xf32> -> vector<16x128xf32>
    %c1 = arith.constant 1 : index
    %c0_10 = arith.constant 0 : index
    %12 = vector.load %arg3[%c1, %c0_10] : memref<3x128xf32, #tpu.memory_space<vmem>>, vector<1x128xf32>
    %13 = vector.broadcast %12 : vector<1x128xf32> to vector<16x128xf32>
    %14 = arith.addf %11, %13 : vector<16x128xf32>
    %cst_11 = arith.constant 0.000000e+00 : f32
    %15 = vector.broadcast %cst_11 : f32 to vector<16x128xf32>
    %16 = arith.maximumf %14, %15 : vector<16x128xf32>
    %17 = arith.truncf %16 : vector<16x128xf32> to vector<16x128xbf16>
    %c1_12 = arith.constant 1 : index
    %c0_13 = arith.constant 0 : index
    %c0_14 = arith.constant 0 : index
    %18 = vector.load %arg2[%c1_12, %c0_13, %c0_14] : memref<2x128x128xbf16, #tpu.memory_space<vmem>>, vector<1x128x128xbf16>
    %19 = vector.shape_cast %18 : vector<1x128x128xbf16> to vector<128x128xbf16>
    %cst_15 = arith.constant dense<0.000000e+00> : vector<16x128xf32>
    %20 = tpu.matmul %17, %19, %cst_15 {dimension_numbers = #tpu.dot_dimension_numbers<[1], [0], [0], [1], [0, 0, 1, 1], [], []>} : vector<16x128xbf16>, vector<128x128xbf16>, vector<16x128xf32> -> vector<16x128xf32>
    %c2 = arith.constant 2 : index
    %c0_16 = arith.constant 0 : index
    %21 = vector.load %arg3[%c2, %c0_16] : memref<3x128xf32, #tpu.memory_space<vmem>>, vector<1x128xf32>
    %22 = vector.broadcast %21 : vector<1x128xf32> to vector<16x128xf32>
    %23 = arith.addf %20, %22 : vector<16x128xf32>
    %c0_17 = arith.constant 0 : index
    %c0_18 = arith.constant 0 : index
    %24 = vector.load %arg4[%c0_17, %c0_18] : memref<16x128xf32, #tpu.memory_space<vmem>>, vector<16x128xf32>
    tpu.vector_store %arg4[%c0_17, %c0_18], %23 {strides = array<i32>} : memref<16x128xf32, #tpu.memory_space<vmem>>, vector<16x128xf32>,
    return
  }
}

</mosaic_0001>

<bundles_post_ra>
// kernel: dam_general_ml_forward.1
= control target key start
LH: loop header
LB: loop body
LE: loop exit
PB: predicated region body
PF: predicated region fallthrough
CT: control target
= control target key end

     0   :  { %v1087_v54 = vmov 0.0   ;;  %vm1088_vm0 = vmmov 0   ;;  %s1357_s1 = inlined_call_operand.vmem [shape: bf16[768,128], index: 1, kind: input, shape index: {}]   ;;  %s1358_s0 = inlined_call_operand.vmem [shape: bf16[16,768], index: 0, kind: input, shape index: {}]   ;;  %s1359_s2 = inlined_call_operand.vmem [shape: bf16[2,128,128], index: 2, kind: input, shape index: {}]   ;;  %s1360_s3 = inlined_call_operand.vmem [shape: f32[3,128], index: 3, kind: input, shape index: {}]   ;;  %s1361_s4 = inlined_call_operand.vmem [shape: f32[16,128], index: 4, kind: output, shape index: {}]  }
   0x1   :  { %v1014_v0 = vld [vmem:[%s1357_s1 + $0x40] sm:$0xff]   ;;  %v1018_v4 = vld [vmem:[%s1357_s1 + $0x48] sm:$0xff]   ;;  %v1022_v8 = vld [vmem:[%s1357_s1 + $0x50] sm:$0xff]  }
   0x2   :  { %v1015_v1 = vld [vmem:[%s1357_s1] sm:$0xff]   ;;  %888 = vmatprep.subr.bf16.mxu0 %v1014_v0  ;;  %v1019_v5 = vld [vmem:[%s1357_s1 + $0x8] sm:$0xff]   ;;  %v1023_v9 = vld [vmem:[%s1357_s1 + $0x10] sm:$0xff]  }
   0x3   :  { %v1016_v2 = vld [vmem:[%s1357_s1 + $0xc0] sm:$0xff]   ;;  %889 = vmatpush3.bf16.msra.mxu0 %v1015_v1  ;;  %v1020_v6 = vld [vmem:[%s1357_s1 + $0xc8] sm:$0xff]   ;;  %v1024_v10 = vld [vmem:[%s1357_s1 + $0xd0] sm:$0xff]  }
   0x4   :  { %v1017_v3 = vld [vmem:[%s1357_s1 + $0x80] sm:$0xff]   ;;  %910 = vmatprep.subr.bf16.mxu1 %v1016_v2  ;;  %890 = vmatprep.subr.bf16.mxu0 %v1018_v4  ;;  %v1021_v7 = vld [vmem:[%s1357_s1 + $0x88] sm:$0xff]   ;;  %v1025_v11 = vld [vmem:[%s1357_s1 + $0x90] sm:$0xff]  }
   0x5   :  { %911 = vmatpush3.bf16.msra.mxu1 %v1017_v3  ;;  %v1026_v12 = vld [vmem:[%s1357_s1 + $0x58] sm:$0xff]   ;;  %v1030_v16 = vld [vmem:[%s1357_s1 + $0x60] sm:$0xff]   ;;  %v1034_v20 = vld [vmem:[%s1357_s1 + $0x68] sm:$0xff]  }
   0x6   :  { %912 = vmatprep.subr.bf16.mxu1 %v1020_v6  ;;  %v1027_v13 = vld [vmem:[%s1357_s1 + $0x18] sm:$0xff]   ;;  %v1031_v17 = vld [vmem:[%s1357_s1 + $0x20] sm:$0xff]   ;;  %v1035_v21 = vld [vmem:[%s1357_s1 + $0x28] sm:$0xff]  }
   0x7   :  { %891 = vmatpush3.bf16.msra.mxu0 %v1019_v5  ;;  %v1028_v14 = vld [vmem:[%s1357_s1 + $0xd8] sm:$0xff]   ;;  %v1032_v18 = vld [vmem:[%s1357_s1 + $0xe0] sm:$0xff]   ;;  %v1036_v22 = vld [vmem:[%s1357_s1 + $0xe8] sm:$0xff]  }
   0x8   :  { %892 = vmatprep.subr.bf16.mxu0 %v1022_v8  ;;  %v1029_v15 = vld [vmem:[%s1357_s1 + $0x98] sm:$0xff]   ;;  %v1033_v19 = vld [vmem:[%s1357_s1 + $0xa0] sm:$0xff]   ;;  %v1037_v23 = vld [vmem:[%s1357_s1 + $0xa8] sm:$0xff]  }
   0x9   :  { %913 = vmatpush3.bf16.msra.mxu1 %v1021_v7  ;;  %v1038_v24 = vld [vmem:[%s1357_s1 + $0x70] sm:$0xff]   ;;  %v1042_v28 = vld [vmem:[%s1357_s1 + $0x78] sm:$0xff]   ;;  %v1049_v34 = vld [vmem:[%s1357_s1 + $0x140] sm:$0xff]  }
   0xa   :  { %914 = vmatprep.subr.bf16.mxu1 %v1024_v10  ;;  %v1039_v25 = vld [vmem:[%s1357_s1 + $0x30] sm:$0xff]   ;;  %v1043_v29 = vld [vmem:[%s1357_s1 + $0x38] sm:$0xff]   ;;  %v1050_v35 = vld [vmem:[%s1358_s0 + $0x8] ss:$24 sps:$4 sm:$0xff]  }
   0xb   :  { %893 = vmatpush3.bf16.msra.mxu0 %v1023_v9  ;;  %v1040_v26 = vld [vmem:[%s1357_s1 + $0xf0] sm:$0xff]   ;;  %v1044_v30 = vld [vmem:[%s1357_s1 + $0xf8] sm:$0xff]   ;;  %v1052_v36 = vld [vmem:[%s1358_s0 + $0xc] ss:$24 sps:$4 sm:$0xff]  }
   0xc   :  { %894 = vmatprep.subr.bf16.mxu0 %v1026_v12  ;;  %v1041_v27 = vld [vmem:[%s1357_s1 + $0xb0] sm:$0xff]   ;;  %v1045_v31 = vld [vmem:[%s1358_s0] ss:$24 sps:$4 sm:$0xff]   ;;  %v1047_v32 = vld [vmem:[%s1358_s0 + $0x4] ss:$24 sps:$4 sm:$0xff]   ;;  %516 = vmatprep.mubr.bf16.mxu1 %v1052_v36 }
   0xd   :  { %915 = vmatpush3.bf16.msra.mxu1 %v1025_v11  ;;  %v1048_v33 = vld [vmem:[%s1357_s1 + $0xb8] sm:$0xff]   ;;  %475 = vmatprep.mubr.bf16.mxu0 %v1047_v32  ;;  %v1053_v37 = vld [vmem:[%s1357_s1 + $0x100] sm:$0xff]   ;;  %v1054_v38 = vld [vmem:[%s1357_s1 + $0x148] sm:$0xff]  }
   0xe   :  { %916 = vmatprep.subr.bf16.mxu1 %v1028_v14  ;;  %v1055_v39 = vld [vmem:[%s1357_s1 + $0x108] sm:$0xff]   ;;  %v1056_v40 = vld [vmem:[%s1357_s1 + $0x150] sm:$0xff]   ;;  %v1058_v42 = vld [vmem:[%s1357_s1 + $0x158] sm:$0xff]  }
   0xf   :  { %895 = vmatpush3.bf16.msra.mxu0 %v1027_v13  ;;  %v1057_v41 = vld [vmem:[%s1357_s1 + $0x110] sm:$0xff]   ;;  %v1059_v43 = vld [vmem:[%s1357_s1 + $0x118] sm:$0xff]   ;;  %v1060_v44 = vld [vmem:[%s1357_s1 + $0x160] sm:$0xff]  }
  0x10   :  { %896 = vmatprep.subr.bf16.mxu0 %v1030_v16  ;;  %v1061_v45 = vld [vmem:[%s1357_s1 + $0x120] sm:$0xff]   ;;  %v1062_v46 = vld [vmem:[%s1357_s1 + $0x168] sm:$0xff]   ;;  %v1064_v49 = vld [vmem:[%s1357_s1 + $0x170] sm:$0xff]  }
  0x11   :  { %917 = vmatpush3.bf16.msra.mxu1 %v1029_v15  ;;  %v1070_v47 = vld [vmem:[%s1358_s0 + $0x14] ss:$24 sps:$4 sm:$0xff]   ;;  %v1066_v51 = vld [vmem:[%s1357_s1 + $0x178] sm:$0xff]   ;;  %v1068_v53 = vld [vmem:[%s1358_s0 + $0x10] ss:$24 sps:$4 sm:$0xff]  }
  0x12   :  { %918 = vmatprep.subr.bf16.mxu1 %v1032_v18  ;;  %v1063_v48 = vld [vmem:[%s1357_s1 + $0x128] sm:$0xff]   ;;  %v1065_v50 = vld [vmem:[%s1357_s1 + $0x130] sm:$0xff]   ;;  %v1067_v52 = vld [vmem:[%s1357_s1 + $0x138] sm:$0xff]  }
  0x13   :  { %897 = vmatpush3.bf16.msra.mxu0 %v1031_v17  ;;  %v1071_v55 = vld [vmem:[%s1359_s2] sm:$0xff]   ;;  %v1072_v56 = vld [vmem:[%s1359_s2 + $0x8] sm:$0xff]   ;;  %v1073_v57 = vld [vmem:[%s1359_s2 + $0x10] sm:$0xff]  }
  0x14   :  { %898 = vmatprep.subr.bf16.mxu0 %v1034_v20  ;;  %v1074_v58 = vld [vmem:[%s1359_s2 + $0x18] sm:$0xff]   ;;  %v1075_v59 = vld [vmem:[%s1359_s2 + $0x20] sm:$0xff]   ;;  %v1076_v60 = vld [vmem:[%s1359_s2 + $0x28] sm:$0xff]  }
  0x15   :  { %919 = vmatpush3.bf16.msra.mxu1 %v1033_v19  ;;  %v1077_v61 = vld [vmem:[%s1359_s2 + $0x30] sm:$0xff]   ;;  %v1078_v62 = vld [vmem:[%s1359_s2 + $0x38] sm:$0xff]   ;;  %v1079_v63 = vld [vmem:[%s1359_s2 + $0x40] sm:$0xff]  }
  0x16   :  { %920 = vmatprep.subr.bf16.mxu1 %v1036_v22  ;;  %v1080_v0 = vld [vmem:[%s1359_s2 + $0x48] sm:$0xff]   ;;  %v1081_v1 = vld [vmem:[%s1359_s2 + $0x50] sm:$0xff]   ;;  %v1082_v2 = vld [vmem:[%s1359_s2 + $0x58] sm:$0xff]  }
  0x17   :  { %899 = vmatpush3.bf16.msra.mxu0 %v1035_v21  ;;  %v1083_v3 = vld [vmem:[%s1359_s2 + $0x60] sm:$0xff]   ;;  %v1084_v4 = vld [vmem:[%s1359_s2 + $0x68] sm:$0xff]  }
  0x18   :  { %900 = vmatprep.subr.bf16.mxu0 %v1038_v24  ;;  %v799_v6 = vld [vmem:[%s1360_s3] ss:$0 sm:$0xff] }
  0x19   :  { %921 = vmatpush3.bf16.msra.mxu1 %v1037_v23 }
  0x1a   :  { %922 = vmatprep.subr.bf16.mxu1 %v1040_v26 }
  0x1b   :  { %901 = vmatpush3.bf16.msra.mxu0 %v1039_v25 }
  0x1c   :  { %902 = vmatprep.subr.bf16.mxu0 %v1042_v28 }
  0x1d   :  { %923 = vmatpush3.bf16.msra.mxu1 %v1041_v27 }
  0x1e   :  { %924 = vmatprep.subr.bf16.mxu1 %v1044_v30 }
  0x1f   :  { %903 = vmatpush3.bf16.msra.mxu0 %v1043_v29 }
  0x20   :  { %932 = vmatprep.subr.bf16.mxu0 %v1049_v34  ;;  %v1086_v34 = vld [vmem:[%s1359_s2 + $0x78] sm:$0xff]  }
  0x21   :  { %925 = vmatpush3.bf16.msra.mxu1 %v1048_v33  ;;  %v1085_v33 = vld [vmem:[%s1359_s2 + $0x70] sm:$0xff]  }
  0x22   :  { %476 = vmatmul.mubr.bf16.vlgmr.msra.gmra.mrb[0].mxu0 %v1045_v31  ;;  %972 = vmatprep.subr.bf16.mxu1 %v1087_v54 }
  0x23   :  { %933 = vmatpush3.bf16.msra.mxu0 %v1053_v37  ;;  %557 = vmatprep.mubr.bf16.mxu0 %v1070_v47 }
  0x24   :  { %517 = vmatmul.mubr.bf16.vlgmr.msra.gmra.mrb[0].mxu1 %v1050_v35  ;;  %934 = vmatprep.subr.bf16.mxu0 %v1054_v38  ;;  %v854_v35 = vld [vmem:[%s1360_s3 + $0x1] ss:$0 sm:$0xff] }
  0x25   :  { %973 = vmatpush3.bf16.msra.mxu1 %v1071_v55  ;;  %988 = vmatprep.mubr.msk.bf16.mxu1 %vm1088_vm0, %v1087_v54 }
  0x26   :  { %974 = vmatprep.subr.bf16.mxu1 %v1087_v54 }
  0x27   :  { %935 = vmatpush3.bf16.msra.mxu0 %v1055_v39 }
  0x28   :  { %936 = vmatprep.subr.bf16.mxu0 %v1056_v40 }
  0x29   :  { %975 = vmatpush3.bf16.msra.mxu1 %v1072_v56 }
  0x2a   :  { %976 = vmatprep.subr.bf16.mxu1 %v1087_v54 }
  0x2b   :  { %937 = vmatpush3.bf16.msra.mxu0 %v1057_v41 }
  0x2c   :  { %938 = vmatprep.subr.bf16.mxu0 %v1058_v42 }
  0x2d   :  { %977 = vmatpush3.bf16.msra.mxu1 %v1073_v57 }
  0x2e   :  { %978 = vmatprep.subr.bf16.mxu1 %v1087_v54 }
  0x2f   :  { %939 = vmatpush3.bf16.msra.mxu0 %v1059_v43 }
  0x30   :  { %940 = vmatprep.subr.bf16.mxu0 %v1060_v44 }
  0x31   :  { %979 = vmatpush3.bf16.msra.mxu1 %v1074_v58 }
  0x32   :  { %980 = vmatprep.subr.bf16.mxu1 %v1087_v54 }
  0x33   :  { %941 = vmatpush3.bf16.msra.mxu0 %v1061_v45  ;;  %v879_v45 = vld [vmem:[%s1360_s3 + $0x2] ss:$0 sm:$0xff] }
  0x34   :  { %942 = vmatprep.subr.bf16.mxu0 %v1062_v46 }
  0x35   :  { %981 = vmatpush3.bf16.msra.mxu1 %v1075_v59 }
  0x36   :  { %982 = vmatprep.subr.bf16.mxu1 %v1087_v54 }
  0x37   :  { %943 = vmatpush3.bf16.msra.mxu0 %v1063_v48 }
  0x38   :  { %944 = vmatprep.subr.bf16.mxu0 %v1064_v49 }
  0x39   :  { %983 = vmatpush3.bf16.msra.mxu1 %v1076_v60 }
  0x3a   :  { %984 = vmatprep.subr.bf16.mxu1 %v1087_v54 }
  0x3b   :  { %945 = vmatpush3.bf16.msra.mxu0 %v1065_v50 }
  0x3c   :  { %946 = vmatprep.subr.bf16.mxu0 %v1066_v51 }
  0x3d   :  { %985 = vmatpush3.bf16.msra.mxu1 %v1077_v61 }
  0x3e   :  { %986 = vmatprep.subr.bf16.mxu1 %v1087_v54 }
  0x3f   :  { %947 = vmatpush3.bf16.msra.mxu0 %v1067_v52 }
  0x40   :  { %992 = vmatprep.subr.bf16.mxu0 %v1087_v54 }
  0x41   :  { %987 = vmatpush3.bf16.msra.mxu1 %v1078_v62 }
  0x42   :  { %558 = vmatmul.mubr.bf16.vlgmr.msra.gmra.mrb[4].mxu0 %v1068_v53 }
  0x43   :  { %1008 = vmatprep.mubr.msk.bf16.mxu0 %vm1088_vm0, %v1087_v54  ;;  %993 = vmatpush3.bf16.msra.mxu0 %v1079_v63 }
  0x44   :  { %994 = vmatprep.subr.bf16.mxu0 %v1087_v54 }
  0x47   :  { %995 = vmatpush3.bf16.msra.mxu0 %v1080_v0 }
  0x48   :  { %996 = vmatprep.subr.bf16.mxu0 %v1087_v54 }
  0x4b   :  { %997 = vmatpush3.bf16.msra.mxu0 %v1081_v1 }
  0x4c   :  { %998 = vmatprep.subr.bf16.mxu0 %v1087_v54 }
  0x4f   :  { %999 = vmatpush3.bf16.msra.mxu0 %v1082_v2 }
  0x50   :  { %1000 = vmatprep.subr.bf16.mxu0 %v1087_v54 }
  0x53   :  { %1001 = vmatpush3.bf16.msra.mxu0 %v1083_v3 }
  0x54   :  { %1002 = vmatprep.subr.bf16.mxu0 %v1087_v54 }
  0x57   :  { %1003 = vmatpush3.bf16.msra.mxu0 %v1084_v4 }
  0x58   :  { %1004 = vmatprep.subr.bf16.mxu0 %v1087_v54 }
  0x5b   :  { %1005 = vmatpush3.bf16.msra.mxu0 %v1085_v33 }
  0x5c   :  { %1006 = vmatprep.subr.bf16.mxu0 %v1087_v54 }
  0x5f   :  { %1007 = vmatpush3.bf16.msra.mxu0 %v1086_v34 }
  0xf5   :  { %v904_v5 = vpop.f32.mrb[0].mxu0 }
  0xf6   :  { %v905_v7 = vpop.f32.mrb[1].mxu0 }
  0xf7   :  { %v906_v8 = vadd.f32 %v905_v7, %v904_v5  ;;  %v907_v9 = vpop.f32.mrb[2].mxu0  ;;  %v926_v10 = vpop.f32.mrb[0].mxu1 }
  0xf8   :  { %v908_v11 = vpop.f32.mrb[3].mxu0  ;;  %v927_v14 = vpop.f32.mrb[1].mxu1 }
  0xf9   :  { %v478_v12 = vadd.f32 %v906_v8, %v799_v6  ;;  %v909_v13 = vadd.f32 %v908_v11, %v907_v9  ;;  %v928_v15 = vadd.f32 %v927_v14, %v926_v10  ;;  %v929_v16 = vpop.f32.mrb[2].mxu1 }
  0xfa   :  { %v930_v18 = vpop.f32.mrb[3].mxu1 }
  0xfb   :  { %v481_v17 = vadd.f32 %v909_v13, %v799_v6  ;;  %v519_v19 = vadd.f32 %v928_v15, %v478_v12  ;;  %v931_v20 = vadd.f32 %v930_v18, %v929_v16 }
  0xfd   :  { %v522_v21 = vadd.f32 %v931_v20, %v481_v17 }
 0x115   :  { %v948_v22 = vpop.f32.mrb[4].mxu0 }
 0x116   :  { %v949_v23 = vpop.f32.mrb[5].mxu0 }
 0x117   :  { %v950_v24 = vadd.f32 %v949_v23, %v948_v22  ;;  %v951_v25 = vpop.f32.mrb[6].mxu0 }
 0x118   :  { %v952_v26 = vpop.f32.mrb[7].mxu0 }
 0x119   :  { %v560_v27 = vadd.f32 %v950_v24, %v519_v19  ;;  %v953_v28 = vadd.f32 %v952_v26, %v951_v25 }
 0x11b   :  { %v563_v29 = vadd.f32 %v953_v28, %v522_v21  ;;  %v566_v30 = vmax.f32 %v560_v27, 0.0 }
 0x11d   :  { %v567_v31 = vmax.f32 %v563_v29, 0.0 }
 0x11f   :  { %v568_v32 = vpack.c.bf16 %v567_v31, %v566_v30 }
 0x121   :  { %989 = vmatmul.mubr.bf16.vlgmr.msra.gmra.mrb[4].mxu1 %v568_v32 }
 0x1f4   :  { %v672_v36 = vpop.f32.mrb[4].mxu1 }
 0x1f5   :  { %v673_v37 = vadd.f32 %v854_v35, %v672_v36  ;;  %v990_v38 = vpop.f32.mrb[5].mxu1 }
 0x1f6   :  { %v675_v39 = vpop.f32.mrb[6].mxu1 }
 0x1f7   :  { %v676_v40 = vadd.f32 %v854_v35, %v675_v39  ;;  %v991_v41 = vpop.f32.mrb[7].mxu1  ;;  %v679_v42 = vmax.f32 %v673_v37, 0.0 }
 0x1f9   :  { %v680_v43 = vmax.f32 %v676_v40, 0.0 }
 0x1fb   :  { %v681_v44 = vpack.c.bf16 %v680_v43, %v679_v42 }
 0x1fd   :  { %1009 = vmatmul.mubr.bf16.vlgmr.msra.gmra.mrb[8].mxu0 %v681_v44 }
 0x2d0   :  { %v786_v46 = vpop.f32.mrb[8].mxu0 }
 0x2d1   :  { %v787_v47 = vadd.f32 %v879_v45, %v786_v46  ;;  %v1010_v48 = vpop.f32.mrb[9].mxu0 }
 0x2d2   :  { %v789_v49 = vpop.f32.mrb[10].mxu0 }
 0x2d3   :  { %793 = vst [vmem:[%s1361_s4] sm:$0xff] %v787_v47  ;;  %v790_v50 = vadd.f32 %v879_v45, %v789_v49  ;;  %v1011_v51 = vpop.f32.mrb[11].mxu0 }
 0x2d5   :  { %794 = vst [vmem:[%s1361_s4 + $0x8] sm:$0xff] %v790_v50 }

</bundles_post_ra>
